<compile_context>
chip_gen: v7x
topology: tpu7x:2x2x1
jax: 0.10.0
libtpu: 0.0.40
codegen_flags: <defaults>
</compile_context>

<pallas_src>
import functools

import jax
import jax.numpy as jnp
from jax.experimental import pallas as pl
from jax.experimental.pallas import tpu as pltpu

TM = 256       # target M-tile for the matmul
TN = 256       # N-tile (stage4's Cout=512 still gets 2 parallel N tiles)
EW_ROWS = 512  # row tile for elementwise kernels


# ------------------------------------------------------------------ helpers --

def _round_up(x, m):
    return ((x + m - 1) // m) * m


def _split_even(m, target):
    """Pad m to a multiple of 16 (bf16 sublane packing) and split into
    near-equal 16-aligned tiles <= target."""
    mp = _round_up(m, 16)
    if mp <= target:
        return mp, mp
    nt = -(-mp // target)                   # ceil
    tm = _round_up(-(-mp // nt), 16)
    return tm * nt, tm


def _fold_lanes(x2d):
    """(M, C) -> (M/f, C*f), f = 128//C when C < 128, for lane-dense stores."""
    m, c = x2d.shape
    if c < 128 and 128 % c == 0 and m % (128 // c) == 0:
        f = 128 // c
        return x2d.reshape(m // f, c * f), f
    return x2d, 1


# ------------------------------------------------------------------ kernels --

def _matmul_stats_kernel(x_ref, w_ref, o_ref, st_ref):
    """Full-K bf16 matmul (f32 MXU accumulate) + per-M-tile BN partial stats."""
    r = jnp.dot(x_ref[...], w_ref[...], preferred_element_type=jnp.float32)
    o_ref[...] = r.astype(o_ref.dtype)
    s = jnp.sum(r, axis=0, keepdims=True)
    ss = jnp.sum(r * r, axis=0, keepdims=True)
    st_ref[...] = jnp.concatenate([s, ss], axis=0)[None]    # (1, 2, tn)


def _affine_kernel(x_ref, sc_ref, sh_ref, o_ref, *, relu):
    y = x_ref[...].astype(jnp.float32) * sc_ref[...] + sh_ref[...]
    if relu:
        y = jnp.maximum(y, 0.0)
    o_ref[...] = y.astype(o_ref.dtype)


def _affine_add_kernel(x_ref, sc_ref, sh_ref, r_ref, o_ref, *, relu):
    y = (x_ref[...].astype(jnp.float32) * sc_ref[...] + sh_ref[...]
         + r_ref[...].astype(jnp.float32))
    if relu:
        y = jnp.maximum(y, 0.0)
    o_ref[...] = y.astype(o_ref.dtype)


def _maxpool3x3s2_kernel(x_ref, o_ref, wbuf):
    """Fused MaxPool2d(3, stride=2, padding=1) for one sample.

    x_ref: (1, hp, wp, C) -inf-padded input;  wbuf: (1, hp, wo, C) f32 scratch;
    o_ref: (1, ho, wo, C).  Taps are static size-1 slices (unrolled).
    """
    wo = wbuf.shape[2]
    ho = o_ref.shape[1]
    for j in range(wo):                       # W-direction taps, stride 2
        a = x_ref[:, :, pl.ds(2 * j, 1), :].astype(jnp.float32)
        b = x_ref[:, :, pl.ds(2 * j + 1, 1), :].astype(jnp.float32)
        c = x_ref[:, :, pl.ds(2 * j + 2, 1), :].astype(jnp.float32)
        wbuf[:, :, pl.ds(j, 1), :] = jnp.maximum(jnp.maximum(a, b), c)
    for i in range(ho):                       # H-direction taps, stride 2
        r0 = wbuf[:, pl.ds(2 * i, 1), :, :]
        r1 = wbuf[:, pl.ds(2 * i + 1, 1), :, :]
        r2 = wbuf[:, pl.ds(2 * i + 2, 1), :, :]
        o_ref[:, pl.ds(i, 1), :, :] = (
            jnp.maximum(jnp.maximum(r0, r1), r2).astype(o_ref.dtype))


def _gap_kernel(x_ref, o_ref):
    o_ref[...] = jnp.mean(x_ref[...].astype(jnp.float32), axis=1, keepdims=True)


# ----------------------------------------------------------------- wrappers --

def matmul_bn_stats(x, w):
    """x:(M,K) bf16, w:(K,N) bf16 -> (y:(M,N) bf16, s:(1,N) f32, ss:(1,N) f32).

    Single full-K block; grid (N-tiles, M-tiles), both parallel; BN batch
    statistics come back as per-M-tile partials and are reduced here.
    """
    m, k = x.shape
    _, n = w.shape
    mp, tm = _split_even(m, TM)
    tn = n if n <= TN else TN
    assert n % tn == 0

    if mp != m:
        x = jnp.pad(x, ((0, mp - m), (0, 0)))       # zero rows: stats-neutral
    mt = mp // tm

    y, st = pl.pallas_call(
        _matmul_stats_kernel,
        out_shape=(jax.ShapeDtypeStruct((mp, n), jnp.bfloat16),
                   jax.ShapeDtypeStruct((mt, 2, n), jnp.float32)),
        grid=(n // tn, mt),
        in_specs=[pl.BlockSpec((tm, k), lambda j, i: (i, 0)),
                  pl.BlockSpec((k, tn), lambda j, i: (0, j))],
        out_specs=(pl.BlockSpec((tm, tn), lambda j, i: (i, j)),
                   pl.BlockSpec((1, 2, tn), lambda j, i: (i, 0, j))),
        compiler_params=pltpu.CompilerParams(
            dimension_semantics=("parallel", "parallel")),
    )(x, w)

    s = jnp.sum(st[:, 0, :], axis=0, keepdims=True)
    ss = jnp.sum(st[:, 1, :], axis=0, keepdims=True)
    return y[:m], s, ss


def _im2col(x, kh, kw, stride, pad):
    """NHWC (bf16) -> (N*Ho*Wo, kh*kw*C) patches + output spatial dims."""
    n, h, w, c = x.shape
    ho = (h + 2 * pad - kh) // stride + 1
    wo = (w + 2 * pad - kw) // stride + 1
    xp = jnp.pad(x, ((0, 0), (pad, pad), (pad, pad), (0, 0)))
    cols = []
    for i in range(kh):
        for j in range(kw):
            cols.append(xp[:, i:i + stride * (ho - 1) + 1:stride,
                           j:j + stride * (wo - 1) + 1:stride, :])
    patches = jnp.concatenate(cols, axis=-1)
    return patches.reshape(n * ho * wo, kh * kw * c), (n, ho, wo)


def conv_bn_stats(x, w, stride, pad):
    """Bias-free conv (NHWC x, (KH,KW,Cin,Cout) w) + fused BN batch statistics."""
    kh, kw, cin, cout = w.shape
    patches, dims = _im2col(x.astype(jnp.bfloat16), kh, kw, stride, pad)
    y, s, ss = matmul_bn_stats(patches, w.reshape(kh * kw * cin, cout))
    return y, s, ss, dims


def bn_scale_shift(s, ss, m_count, gamma, beta, eps=1e-5):
    """Training-mode BatchNorm scale/shift from fused per-channel sums."""
    mean = s / m_count
    var = jnp.maximum(ss / m_count - mean * mean, 0.0)    # biased var, clamped
    scale = gamma.reshape(1, -1) * jax.lax.rsqrt(var + eps)
    shift = beta.reshape(1, -1) - mean * scale
    return scale, shift


def bn_affine(x2d, scale, shift, relu, res2d=None):
    """y = x*scale + shift (+ residual) (+ ReLU); row-tiled, lane-folded for C<128."""
    m, c = x2d.shape
    xf, f = _fold_lanes(x2d)
    if f > 1:
        scale = jnp.tile(scale, (1, f))
        shift = jnp.tile(shift, (1, f))
    mf, cf = xf.shape
    mp, tm = _split_even(mf, EW_ROWS)

    def padrows(t):
        return jnp.pad(t, ((0, mp - mf), (0, 0))) if mp != mf else t

    inputs = [padrows(xf), scale, shift]
    in_specs = [pl.BlockSpec((tm, cf), lambda i: (i, 0)),
                pl.BlockSpec((1, cf), lambda i: (0, 0)),
                pl.BlockSpec((1, cf), lambda i: (0, 0))]
    if res2d is None:
        kernel = functools.partial(_affine_kernel, relu=relu)
    else:
        rf, _ = _fold_lanes(res2d)
        inputs.append(padrows(rf))
        in_specs.append(pl.BlockSpec((tm, cf), lambda i: (i, 0)))
        kernel = functools.partial(_affine_add_kernel, relu=relu)

    out = pl.pallas_call(
        kernel,
        out_shape=jax.ShapeDtypeStruct((mp, cf), jnp.bfloat16),
        grid=(mp // tm,),
        in_specs=in_specs,
        out_specs=pl.BlockSpec((tm, cf), lambda i: (i, 0)),
        compiler_params=pltpu.CompilerParams(dimension_semantics=("parallel",)),
    )(*inputs)
    return out[:mf].reshape(m, c)


def maxpool_3x3_s2(x):
    """MaxPool2d(kernel=3, stride=2, padding=1); one fused Pallas call."""
    n, h, w, c = x.shape
    ho = (h + 2 - 3) // 2 + 1
    wo = (w + 2 - 3) // 2 + 1
    hp, wp = h + 2, w + 2
    xp = jnp.pad(x, ((0, 0), (1, 1), (1, 1), (0, 0)),
                 constant_values=float("-inf"))
    return pl.pallas_call(
        _maxpool3x3s2_kernel,
        out_shape=jax.ShapeDtypeStruct((n, ho, wo, c), x.dtype),
        grid=(n,),
        in_specs=[pl.BlockSpec((1, hp, wp, c), lambda i: (i, 0, 0, 0))],
        out_specs=pl.BlockSpec((1, ho, wo, c), lambda i: (i, 0, 0, 0)),
        scratch_shapes=[pltpu.VMEM((1, hp, wo, c), jnp.float32)],
        compiler_params=pltpu.CompilerParams(dimension_semantics=("parallel",)),
    )(xp)


def global_avg_pool(x):
    """AdaptiveAvgPool2d((1,1)) + flatten: NHWC -> (N, C) f32.

    C<128 feature maps are folded to 128 lanes for dense loads; the remaining
    pair average is finished in the wrapper (equal counts -> exact).
    """
    n, h, w, c = x.shape
    hw = h * w
    f = 1
    if c < 128 and 128 % c == 0 and hw % (128 // c) == 0:
        f = 128 // c
    x3 = x.reshape(n, hw // f, c * f)
    pooled = pl.pallas_call(
        _gap_kernel,
        out_shape=jax.ShapeDtypeStruct((n, 1, c * f), jnp.float32),
        grid=(n,),
        in_specs=[pl.BlockSpec((1, hw // f, c * f), lambda i: (i, 0, 0))],
        out_specs=pl.BlockSpec((1, 1, c * f), lambda i: (i, 0, 0)),
        compiler_params=pltpu.CompilerParams(dimension_semantics=("parallel",)),
    )(x3)
    return jnp.mean(pooled.reshape(n, f, c), axis=1)


# ----------------------------------------------------------- ResNet-34 model --

def basic_block(x, blk):
    """ResNet BasicBlock: conv3x3-bn-relu-conv3x3-bn (+ downsample) + relu."""
    stride = blk['stride']
    cin = x.shape[-1]
    cout = blk['w1'].shape[-1]

    y, s, ss, (n, ho, wo) = conv_bn_stats(x, blk['w1'], stride, 1)
    m = n * ho * wo
    sc, sh = bn_scale_shift(s, ss, m, blk['g1'], blk['b1'])
    h1 = bn_affine(y, sc, sh, relu=True)

    y, s, ss, _ = conv_bn_stats(h1.reshape(n, ho, wo, cout), blk['w2'], 1, 1)
    sc, sh = bn_scale_shift(s, ss, m, blk['g2'], blk['b2'])

    if 'wd' in blk:  # projection shortcut: 1x1 conv (stride) + bn
        yd, sd, ssd, _ = conv_bn_stats(x, blk['wd'], stride, 0)
        scd, shd = bn_scale_shift(sd, ssd, m, blk['gd'], blk['bd'])
        idn = bn_affine(yd, scd, shd, relu=False)
    else:
        idn = x.reshape(-1, cin)

    out = bn_affine(y, sc, sh, relu=True, res2d=idn)
    return out.reshape(n, ho, wo, cout)


def enhanced_feature_extractor(x_nchw, params):
    """forward(): cat([GAP(layer1(x)), GAP(layer2(layer1(x)))], dim=1)."""
    x = jnp.transpose(x_nchw, (0, 2, 3, 1)).astype(jnp.bfloat16)  # NCHW -> NHWC

    # children[:5] = conv1, bn1, relu, maxpool, layer1
    y, s, ss, (n, h, w) = conv_bn_stats(x, params['conv1'], stride=2, pad=3)
    sc, sh = bn_scale_shift(s, ss, n * h * w, params['bn1_g'], params['bn1_b'])
    out = bn_affine(y, sc, sh, relu=True).reshape(n, h, w, 64)
    out = maxpool_3x3_s2(out)
    for blk in params['stage1']:
        out = basic_block(out, blk)
    x1 = out  # (N, H/4, W/4, 64)

    # children[5:-1] = layer2, layer3, layer4, avgpool
    for stage in ('stage2', 'stage3', 'stage4'):
        for blk in params[stage]:
            out = basic_block(out, blk)

    x2_feat = global_avg_pool(out)   # avgpool -> (N, 512); extra 1x1 GAP is identity
    x1_feat = global_avg_pool(x1)    # (N, 64)
    return jnp.concatenate([x1_feat, x2_feat], axis=1)   # (N, 576)


# -------------------------------------------------------- deterministic init --

def make_params(key):
    keys = iter(jax.random.split(key, 256))

    def conv_w(kh, kw, cin, cout):
        fan_in = kh * kw * cin
        w = (jax.random.normal(next(keys), (kh, kw, cin, cout), jnp.float32)
             * jnp.sqrt(2.0 / fan_in))
        return w.astype(jnp.bfloat16)   # MXU-native input width

    params = {
        'conv1': conv_w(7, 7, 3, 64),
        'bn1_g': jnp.ones((64,), jnp.float32),
        'bn1_b': jnp.zeros((64,), jnp.float32),
    }
    # ResNet-34 stages: (name, out_ch, num_blocks, first_stride)
    stage_specs = [('stage1', 64, 3, 1), ('stage2', 128, 4, 2),
                   ('stage3', 256, 6, 2), ('stage4', 512, 3, 2)]
    in_ch = 64
    for name, out_ch, n_blocks, first_stride in stage_specs:
        blocks = []
        for b in range(n_blocks):
            stride = first_stride if b == 0 else 1
            blk = {
                'stride': stride,
                'w1': conv_w(3, 3, in_ch, out_ch),
                'g1': jnp.ones((out_ch,), jnp.float32),
                'b1': jnp.zeros((out_ch,), jnp.float32),
                'w2': conv_w(3, 3, out_ch, out_ch),
                'g2': jnp.ones((out_ch,), jnp.float32),
                'b2': jnp.zeros((out_ch,), jnp.float32),
            }
            if stride != 1 or in_ch != out_ch:
                blk['wd'] = conv_w(1, 1, in_ch, out_ch)
                blk['gd'] = jnp.ones((out_ch,), jnp.float32)
                blk['bd'] = jnp.zeros((out_ch,), jnp.float32)
            blocks.append(blk)
            in_ch = out_ch
        params[name] = blocks
    return params


if __name__ == "__main__":
    key = jax.random.PRNGKey(0)
    pkey, xkey = jax.random.split(key)
    params = make_params(pkey)

    # PyTorch-style NCHW input, small spatial size (32 -> final 1x1 feature map).
    x = jax.random.normal(xkey, (2, 3, 32, 32), jnp.float32)

    feats = enhanced_feature_extractor(x, params)
    feats = jax.block_until_ready(feats)

    assert feats.shape == (2, 64 + 512), feats.shape
    assert bool(jnp.all(jnp.isfinite(feats)))
    print("KERNEL_OK")
</pallas_src>

<mosaic_0001>
module attributes {stable_mosaic.version = 11 : i64} {
  func.func @_matmul_stats_kernel(%arg0: i32, %arg1: i32, %arg2: memref<256x147xbf16, #tpu.memory_space<vmem>>, %arg3: memref<147x64xbf16, #tpu.memory_space<vmem>>, %arg4: memref<256x64xbf16, #tpu.memory_space<vmem>>, %arg5: memref<1x2x64xf32, #tpu.memory_space<vmem>>) attributes {dimension_semantics = [#tpu.dimension_semantics<parallel>, #tpu.dimension_semantics<parallel>], iteration_bounds = array<i64: 1, 2>, scalar_prefetch = 0 : i64, scratch_operands = 0 : i64, tpu.core_type = #tpu.core_type<tc>, window_params = [{transform_indices = @transform_0, window_bounds = array<i64: 256, 147>}, {transform_indices = @transform_1, window_bounds = array<i64: 147, 64>}, {transform_indices = @transform_2, window_bounds = array<i64: 256, 64>}, {transform_indices = @transform_3, window_bounds = array<i64: 1, 2, 64>}]} {
    %c0 = arith.constant 0 : index
    %c0_0 = arith.constant 0 : index
    %0 = vector.load %arg2[%c0, %c0_0] : memref<256x147xbf16, #tpu.memory_space<vmem>>, vector<256x147xbf16>
    %c0_1 = arith.constant 0 : index
    %c0_2 = arith.constant 0 : index
    %1 = vector.load %arg3[%c0_1, %c0_2] : memref<147x64xbf16, #tpu.memory_space<vmem>>, vector<147x64xbf16>
    %cst = arith.constant dense<0.000000e+00> : vector<256x64xf32>
    %2 = tpu.matmul %0, %1, %cst {dimension_numbers = #tpu.dot_dimension_numbers<[1], [0], [0], [1], [0, 0, 1, 1], [], []>} : vector<256x147xbf16>, vector<147x64xbf16>, vector<256x64xf32> -> vector<256x64xf32>
    %3 = arith.truncf %2 : vector<256x64xf32> to vector<256x64xbf16>
    %c0_3 = arith.constant 0 : index
    %c0_4 = arith.constant 0 : index
    %4 = vector.load %arg4[%c0_3, %c0_4] : memref<256x64xbf16, #tpu.memory_space<vmem>>, vector<256x64xbf16>
    tpu.vector_store %arg4[%c0_3, %c0_4], %3 {strides = array<i32>} : memref<256x64xbf16, #tpu.memory_space<vmem>>, vector<256x64xbf16>,
    %cst_5 = arith.constant dense<0.000000e+00> : vector<64xf32>
    %5 = vector.multi_reduction <add>, %2, %cst_5 [0] : vector<256x64xf32> to vector<64xf32>
    %6 = vector.shape_cast %5 : vector<64xf32> to vector<1x64xf32>
    %7 = arith.mulf %2, %2 : vector<256x64xf32>
    %cst_6 = arith.constant dense<0.000000e+00> : vector<64xf32>
    %8 = vector.multi_reduction <add>, %7, %cst_6 [0] : vector<256x64xf32> to vector<64xf32>
    %9 = vector.shape_cast %8 : vector<64xf32> to vector<1x64xf32>
    %10 = tpu.concatenate %6, %9 in 0 : vector<1x64xf32>, vector<1x64xf32> -> vector<2x64xf32>
    %11 = vector.shape_cast %10 : vector<2x64xf32> to vector<1x2x64xf32>
    %c0_7 = arith.constant 0 : index
    %c0_8 = arith.constant 0 : index
    %c0_9 = arith.constant 0 : index
    %12 = vector.load %arg5[%c0_7, %c0_8, %c0_9] : memref<1x2x64xf32, #tpu.memory_space<vmem>>, vector<1x2x64xf32>
    tpu.vector_store %arg5[%c0_7, %c0_8, %c0_9], %11 {strides = array<i32>} : memref<1x2x64xf32, #tpu.memory_space<vmem>>, vector<1x2x64xf32>,
    return
  }
  func.func @transform_0(%arg0: i32, %arg1: i32) -> (i32, i32) {
    %c0_i32 = arith.constant 0 : i32
    %c0_i32_0 = arith.constant 0 : i32
    return %arg1, %c0_i32 : i32, i32
  }
  func.func @transform_1(%arg0: i32, %arg1: i32) -> (i32, i32) {
    %c0_i32 = arith.constant 0 : i32
    %c0_i32_0 = arith.constant 0 : i32
    return %c0_i32, %arg0 : i32, i32
  }
  func.func @transform_2(%arg0: i32, %arg1: i32) -> (i32, i32) {
    %c0_i32 = arith.constant 0 : i32
    return %arg1, %arg0 : i32, i32
  }
  func.func @transform_3(%arg0: i32, %arg1: i32) -> (i32, i32, i32) {
    %c0_i32 = arith.constant 0 : i32
    %c0_i32_0 = arith.constant 0 : i32
    return %arg1, %c0_i32, %arg0 : i32, i32, i32
  }
}

</mosaic_0001>

<bundles_post_ra>
// kernel: tpu_custom_call.1
= control target key start
LH: loop header
LB: loop body
LE: loop exit
PB: predicated region body
PF: predicated region fallthrough
CT: control target
= control target key end

     0   :  { %9 = vsyncpa [#allocation3], 0  ;;  %s1997_s0 = inlined_call_operand.vmem [shape: bf16[512,147], index: 0, kind: input, shape index: {}]   ;;  %s1998_s1 = inlined_call_operand.vmem [shape: bf16[147,64], index: 1, kind: input, shape index: {}]   ;;  %s1999_s2 = inlined_call_operand.vmem [shape: bf16[512,64], index: 2, kind: output, shape index: {0}]   ;;  %s2000_s3 = inlined_call_operand.hbm [shape: f32[2,2,64], index: 3, kind: output, shape index: {1}]  }
   0x1   :  { %11 = vsyncpa [#allocation3 + $0x1], 0  ;;  %s1551_s12 = smov 0   ;;  %s1553_s13 = smov 0  }
   0x2   :  { %s1555_s14 = smov 0   ;;  %s1557_s15 = smov 0  }
   0x3   :  { %s1559_s16 = smov 0   ;;  %s1561_s17 = smov 0  }
   0x4 LB: > { %s1174_s18 = sadd.s32 4294967295, %s1526_s17   ;;  %s1175_s19 = sadd.s32 4294967294, %s1526_s17   ;;  %s1526_s17 = sphi %s1561_s17, %s17_s17   ;;  %s1522_s16 = sphi %s1559_s16, %s2007_s16   ;;  %s1518_s15 = sphi %s1557_s15, %s2006_s15   ;;  %s1514_s14 = sphi %s1555_s14, %s2005_s14   ;;  %s1510_s13 = sphi %s1553_s13, %s2004_s13   ;;  %s1506_s12 = sphi %s1551_s12, %s2003_s12  }
   0x5   : > { %s26_s20 = sadd.s32 1, %s1522_s16  ;;  %s118_s21 = sadd.s32 1, %s1514_s14 }
   0x6   : > { %p27_p0 = scmp.ge.s32.totalorder %s26_s20, 2  ;;  %p128_p1 = scmp.ne.s32.totalorder %s1514_s14, %s1510_s13 }
   0x7   : > { %p129_p2 = scmp.eq.s32.totalorder %s1174_s18, 1  ;;  %p134_p3 = scmp.ne.s32.totalorder %s1510_s13, %s1506_s12 }
   0x8   : > { %s2009_s20 = smov (%p27_p0, %s26_s20), 0  ;;  %p135_p5 = scmp.eq.s32.totalorder %s1175_s19, 1 }
   0x9   : > { %p1591_p4 = por %p129_p2, %p128_p1  ;;  %s113_s23 = ssub.s32 %s1522_s16, %s2009_s20 }
   0xa   : > { %p1179_p6 = scmp.ge.s32.totalorder %s1526_s17, 1  ;;  %p116_p7 = scmp.eq.s32.totalorder %s113_s23, 0 }
   0xb   : > { %p1598_p8 = por %p135_p5, %p134_p3  ;;  %p170_p9 = scmp.lt.s32.totalorder %s1526_s17, 3 }
   0xc   : > { %s1604_s25 = scalar_select %p116_p7, %s1514_s14, %s118_s21  }
   0xd   : > { %p171_p10 = pnand %p1179_p6, %p170_p9 }
   0xe   : > { %v1390_v0 = vld [vmem:[%s1998_s1] sm:$0xff] (!%p171_p10)   ;;  %v1528_v1 = vmov (!%p171_p10), 0   ;;  %v1391_v2 = vld [vmem:[%s1998_s1 + $0x8] sm:$0xff] (!%p171_p10)   ;;  %v1392_v3 = vld [vmem:[%s1998_s1 + $0x10] sm:$0xff] (!%p171_p10)   ;;  %s1616_s5 = sshll.u32 (!%p171_p10), %s1518_s15, 5  ;;  %vm480_vm0 = vcmask (!%p171_p10), 154624  }
   0xf   : > { %174 = sbr.rel (%p171_p10) target bundleno = 389 (0x185), region = 28  ;;  %536 = vmatprep.subr.bf16.mxu0 (!%p171_p10), %v1528_v1  ;;  %1313 = vmatprep.subr.bf16.mxu1 (!%p171_p10), %v1528_v1  ;;  %p208_p11 = scmp.lt.s32.totalorder (!%p171_p10), %s1616_s5, 63  ;;  %v1393_v4 = vld [vmem:[%s1998_s1 + $0x18] sm:$0xff] (!%p171_p10)   ;;  %v1394_v5 = vld [vmem:[%s1998_s1 + $0x20] sm:$0xff] (!%p171_p10)   ;;  %v1395_v7 = vld [vmem:[%s1998_s1 + $0x28] sm:$0xff] (!%p171_p10)   ;;  %vm529_vm1 = vcmask (!%p171_p10), 1040384  }
  0x10   : > { %537 = vmatpush1.bf16.msra.mxu0 (!%p171_p10), %v1390_v0  ;;  %1323 = vmatpush1.bf16.msra.mxu1 (!%p171_p10), %v1390_v0  ;;  %v1396_v9 = vld [vmem:[%s1998_s1 + $0x30] sm:$0xff] (!%p171_p10)   ;;  %v1397_v10 = vld [vmem:[%s1998_s1 + $0x38] sm:$0xff] (!%p171_p10)   ;;  %vm530_vm2 = vcmask (!%p171_p10), 1041408   ;;  %v1529_v11 = vmov (!%p171_p10), 65535   ;;  %v1398_v13 = vld [vmem:[%s1998_s1 + $0x40] sm:$0xff] (!%p171_p10)   ;;  %vm825_vm3 = vcmask (!%p171_p10), 519168   ;;  %s1949_s27 = scalar_lea.hbm (!%p171_p10), %s2000_s3, %s1616_s5 }
  0x11   : > { %538 = vmatprep.subr.bf16.mxu0 (!%p171_p10), %v1528_v1  ;;  %1314 = vmatprep.subr.bf16.mxu1 (!%p171_p10), %v1528_v1  ;;  %v531_v12 = vsel (!%p171_p10), %vm529_vm1, 4294967295, %v1529_v11  ;;  %v1399_v14 = vld [vmem:[%s1998_s1 + $0x48] ss:$0 sps:$4 sm:$0x33] (!%p171_p10)   ;;  %vm858_vm4 = vcmask (!%p171_p10), 523264   ;;  %vm1030_vm5 = vcmask (!%p171_p10), 517120  }
  0x12   : > { %v532_v15 = vsel (!%p171_p10), %vm530_vm2, %v531_v12, 0  ;;  %s1530_s30 = smov (!%p171_p10), [#allocation2]  }
  0x13   : > { %v534_v16 = vand.u32 (!%p171_p10), %v1399_v14, %v532_v15  ;;  %s1452_s4 = sshll.u32 (!%p171_p10), %s1530_s30, 4  ;;  %s1453_s4 = int_to_ptr.vmem [resolvable:$false] %s1452_s4 }
  0x14   : > { %539 = vmatpush1.bf16.msra.mxu0 (!%p171_p10), %v1391_v2  ;;  %1324 = vmatpush1.bf16.msra.mxu1 (!%p171_p10), %v1391_v2  ;;  %s1454_s7 = scalar_lea.vmem (!%p171_p10), %s1453_s4, 64 }
  0x15   : > { %540 = vmatprep.subr.bf16.mxu0 (!%p171_p10), %v1528_v1  ;;  %1315 = vmatprep.subr.bf16.mxu1 (!%p171_p10), %v1528_v1 }
  0x16   : > { %s1620_s6 = scalar_select %p208_p11, %s1616_s5, 63 }
  0x18   : > { %541 = vmatpush1.bf16.msra.mxu0 %v1392_v3  ;;  %1325 = vmatpush1.bf16.msra.mxu1 %v1392_v3  ;;  %s1280_s9 = sshll.u32 %s1620_s6, 3 }
  0x19   : > { %542 = vmatprep.subr.bf16.mxu0 %v1528_v1  ;;  %1316 = vmatprep.subr.bf16.mxu1 %v1528_v1  ;;  %s1629_s15 = scalar_lea.vmem %s1997_s0, %s1280_s9  ;;  %s1185_s9 = sshll.u32 %s1620_s6, 2 }
  0x1a   : > { %v1402_v6 = vld [vmem:[%s1629_s15 + $0x4] ss:$8 sps:$4 sm:$0xff]   ;;  %v1400_v17 = vld [vmem:[%s1629_s15] ss:$8 sps:$4 sm:$0xff]   ;;  %v1403_v19 = vld [vmem:[%s1629_s15 + $0x14] ss:$8 sps:$4 sm:$0xff]   ;;  %s1702_s18 = scalar_lea.vmem %s1999_s2, %s1185_s9 }
  0x1b   : > { %1228 = vmatprep.mubr.msk.bf16.mxu0 %vm480_vm0, %v1402_v6  ;;  %v1414_v8 = vld [vmem:[%s1629_s15 + $0x84] ss:$8 sps:$4 sm:$0xff]   ;;  %v1412_v18 = vld [vmem:[%s1629_s15 + $0x80] ss:$8 sps:$4 sm:$0xff]   ;;  %v1418_v20 = vld [vmem:[%s1629_s15 + $0x94] ss:$8 sps:$4 sm:$0xff]  }
  0x1c   : > { %543 = vmatpush1.bf16.msra.mxu0 %v1393_v4  ;;  %1326 = vmatpush1.bf16.msra.mxu1 %v1393_v4  ;;  %v1405_v21 = vld [vmem:[%s1629_s15 + $0x10] ss:$8 sps:$4 sm:$0xff]   ;;  %v1406_v23 = vld [vmem:[%s1629_s15 + $0x24] ss:$8 sps:$4 sm:$0xff]   ;;  %v1408_v25 = vld [vmem:[%s1629_s15 + $0x20] ss:$8 sps:$4 sm:$0xff]  }
  0x1d   : > { %544 = vmatprep.subr.bf16.mxu0 %v1528_v1  ;;  %1317 = vmatprep.subr.bf16.mxu1 %v1528_v1  ;;  %v1420_v22 = vld [vmem:[%s1629_s15 + $0x90] ss:$8 sps:$4 sm:$0xff]   ;;  %v1424_v24 = vld [vmem:[%s1629_s15 + $0xa4] ss:$8 sps:$4 sm:$0xff]   ;;  %v1426_v26 = vld [vmem:[%s1629_s15 + $0xa0] ss:$8 sps:$4 sm:$0xff]  }
  0x1e   : > { %1236 = vmatprep.mubr.msk.bf16.mxu1 %vm480_vm0, %v1414_v8  ;;  %v1409_v27 = vld [vmem:[%s1629_s15 + $0x34] ss:$8 sps:$4 sm:$0xff]   ;;  %v1411_v29 = vld [vmem:[%s1629_s15 + $0x30] ss:$8 sps:$4 sm:$0xff]   ;;  %v1415_v31 = vld [vmem:[%s1629_s15 + $0x44] ss:$8 sps:$4 sm:$0xff]  }
  0x1f   : > { %v1430_v28 = vld [vmem:[%s1629_s15 + $0xb4] ss:$8 sps:$4 sm:$0xff]   ;;  %v1432_v30 = vld [vmem:[%s1629_s15 + $0xb0] ss:$8 sps:$4 sm:$0xff]   ;;  %v1436_v32 = vld [vmem:[%s1629_s15 + $0xc4] ss:$8 sps:$4 sm:$0xff]  }
  0x20   : > { %545 = vmatpush1.bf16.msra.mxu0 %v1394_v5  ;;  %1327 = vmatpush1.bf16.msra.mxu1 %v1394_v5  ;;  %v1417_v33 = vld [vmem:[%s1629_s15 + $0x40] ss:$8 sps:$4 sm:$0xff]   ;;  %v1421_v35 = vld [vmem:[%s1629_s15 + $0x54] ss:$8 sps:$4 sm:$0xff]   ;;  %v1423_v37 = vld [vmem:[%s1629_s15 + $0x50] ss:$8 sps:$4 sm:$0xff]  }
  0x21   : > { %546 = vmatprep.subr.bf16.mxu0 %v1528_v1  ;;  %1318 = vmatprep.subr.bf16.mxu1 %v1528_v1  ;;  %v1438_v34 = vld [vmem:[%s1629_s15 + $0xc0] ss:$8 sps:$4 sm:$0xff]   ;;  %v1439_v36 = vld [vmem:[%s1629_s15 + $0xd4] ss:$8 sps:$4 sm:$0xff]   ;;  %v1441_v38 = vld [vmem:[%s1629_s15 + $0xd0] ss:$8 sps:$4 sm:$0xff]  }
  0x22   : > { %v1427_v39 = vld [vmem:[%s1629_s15 + $0x64] ss:$8 sps:$4 sm:$0xff]   ;;  %v1429_v41 = vld [vmem:[%s1629_s15 + $0x60] ss:$8 sps:$4 sm:$0xff]   ;;  %v1433_v43 = vld [vmem:[%s1629_s15 + $0x74] ss:$8 sps:$4 sm:$0xff]  }
  0x23   : > { %v1442_v40 = vld [vmem:[%s1629_s15 + $0xe4] ss:$8 sps:$4 sm:$0xff]   ;;  %v1444_v42 = vld [vmem:[%s1629_s15 + $0xe0] ss:$8 sps:$4 sm:$0xff]   ;;  %v1445_v44 = vld [vmem:[%s1629_s15 + $0xf4] ss:$8 sps:$4 sm:$0xff]  }
  0x24   : > { %547 = vmatpush1.bf16.msra.mxu0 %v1395_v7  ;;  %1328 = vmatpush1.bf16.msra.mxu1 %v1395_v7  ;;  %v1435_v45 = vld [vmem:[%s1629_s15 + $0x70] ss:$8 sps:$4 sm:$0xff]   ;;  %s204_s6 = sand.u32 1, %s1510_s13  }
  0x25   : > { %548 = vmatprep.subr.bf16.mxu0 %v1528_v1  ;;  %1319 = vmatprep.subr.bf16.mxu1 %v1528_v1  ;;  %v1447_v46 = vld [vmem:[%s1629_s15 + $0xf0] ss:$8 sps:$4 sm:$0xff]   ;;  %s1180_s15 = sshll.u32 %s204_s6, 1  ;;  %s1041_s28 = scalar_lea.sflag [#allocation3], %s204_s6 }
  0x26   : > { %s206_s19 = scalar_lea.vmem [#allocation2], %s1180_s15 }
  0x27   : > { %s1059_s21 = sshll.u32 %s206_s19, 4  ;;  %s1951_s21 = int_to_ptr.vmem [resolvable:$true] %s1059_s21 }
  0x28   : > { %549 = vmatpush1.bf16.msra.mxu0 %v1396_v9  ;;  %1329 = vmatpush1.bf16.msra.mxu1 %v1396_v9  ;;  %s1448_s29 = scalar_lea.vmem %s1951_s21, 32  ;;  %p1455_p1 = scmp.lt.s32.totalorder %s1951_s21, %s1453_s4 }
  0x29   : > { %550 = vmatprep.subr.bf16.mxu0 %v1528_v1  ;;  %1320 = vmatprep.subr.bf16.mxu1 %v1528_v1  ;;  %p1449_p12 = scmp.ne.s32.totalorder %s1951_s21, %s1448_s29  ;;  %p1456_p2 = scmp.lt.s32.totalorder %s1454_s7, %s1448_s29 }
  0x2b   : > { %p1450_p13 = pnand %p1449_p12, %p1591_p4  ;;  %p1457_p3 = por %p1456_p2, %p1455_p1 }
  0x2c   : > { %551 = vmatpush1.bf16.msra.mxu0 %v1397_v10  ;;  %1330 = vmatpush1.bf16.msra.mxu1 %v1397_v10 }
  0x2d   : > { %552 = vmatprep.subr.bf16.mxu0 %v1528_v1  ;;  %1321 = vmatprep.subr.bf16.mxu1 %v1528_v1  ;;  %p1451_p0 = pneg %p1450_p13 }
  0x2f   : > { %p1458_p5 = pnand %p1457_p3, %p1451_p0 }
  0x30   : > { %553 = vmatpush1.bf16.msra.mxu0 %v1398_v13  ;;  %1331 = vmatpush1.bf16.msra.mxu1 %v1398_v13 }
  0x31   : > { %554 = vmatprep.subr.bf16.mxu0 %v1528_v1  ;;  %1322 = vmatprep.subr.bf16.mxu1 %v1528_v1 }
  0x34   : > { %555 = vmatpush1.bf16.msra.mxu0 %v534_v16  ;;  %1332 = vmatpush1.bf16.msra.mxu1 %v534_v16 }
  0x37   : > { %569 = vmatmul.mubr.bf16.vlgmr.msra.gmra.mrb[0].mxu0 %v1400_v17  ;;  %633 = vmatmul.mubr.bf16.vlgmr.msra.gmra.mrb[0].mxu1 %v1412_v18 }
  0x38   : > { %1229 = vmatprep.mubr.msk.bf16.mxu0 %vm480_vm0, %v1403_v19  ;;  %1237 = vmatprep.mubr.msk.bf16.mxu1 %vm480_vm0, %v1418_v20 }
  0x3f   : > { %577 = vmatmul.mubr.bf16.gmra.mrb[4].mxu0 %v1405_v21  ;;  %641 = vmatmul.mubr.bf16.gmra.mrb[4].mxu1 %v1420_v22 }
  0x40   : > { %1230 = vmatprep.mubr.msk.bf16.mxu0 %vm480_vm0, %v1406_v23  ;;  %1238 = vmatprep.mubr.msk.bf16.mxu1 %vm480_vm0, %v1424_v24 }
  0x47   : > { %585 = vmatmul.mubr.bf16.gmra.mrb[8].mxu0 %v1408_v25  ;;  %649 = vmatmul.mubr.bf16.gmra.mrb[8].mxu1 %v1426_v26 }
  0x48   : > { %1231 = vmatprep.mubr.msk.bf16.mxu0 %vm480_vm0, %v1409_v27  ;;  %1239 = vmatprep.mubr.msk.bf16.mxu1 %vm480_vm0, %v1430_v28 }
  0x4f   : > { %593 = vmatmul.mubr.bf16.gmra.mrb[12].mxu0 %v1411_v29  ;;  %657 = vmatmul.mubr.bf16.gmra.mrb[12].mxu1 %v1432_v30 }
  0x50   : > { %1232 = vmatprep.mubr.msk.bf16.mxu0 %vm480_vm0, %v1415_v31  ;;  %1240 = vmatprep.mubr.msk.bf16.mxu1 %vm480_vm0, %v1436_v32 }
  0x57   : > { %601 = vmatmul.mubr.bf16.gmra.mrb[16].mxu0 %v1417_v33  ;;  %665 = vmatmul.mubr.bf16.gmra.mrb[16].mxu1 %v1438_v34 }
  0x58   : > { %1233 = vmatprep.mubr.msk.bf16.mxu0 %vm480_vm0, %v1421_v35  ;;  %1241 = vmatprep.mubr.msk.bf16.mxu1 %vm480_vm0, %v1439_v36 }
  0x5f   : > { %609 = vmatmul.mubr.bf16.gmra.mrb[20].mxu0 %v1423_v37  ;;  %673 = vmatmul.mubr.bf16.gmra.mrb[20].mxu1 %v1441_v38 }
  0x60   : > { %1234 = vmatprep.mubr.msk.bf16.mxu0 %vm480_vm0, %v1427_v39  ;;  %1242 = vmatprep.mubr.msk.bf16.mxu1 %vm480_vm0, %v1442_v40 }
  0x67   : > { %617 = vmatmul.mubr.bf16.gmra.mrb[24].mxu0 %v1429_v41  ;;  %681 = vmatmul.mubr.bf16.gmra.mrb[24].mxu1 %v1444_v42 }
  0x68   : > { %1235 = vmatprep.mubr.msk.bf16.mxu0 %vm480_vm0, %v1433_v43  ;;  %1243 = vmatprep.mubr.msk.bf16.mxu1 %vm480_vm0, %v1445_v44 }
  0x6f   : > { %625 = vmatmul.mubr.bf16.gmra.mrb[28].mxu0 %v1435_v45  ;;  %689 = vmatmul.mubr.bf16.gmra.mrb[28].mxu1 %v1447_v46 }
 0x10a   : > { %v570_v47 = vpop.f32.mrb[0].mxu0  ;;  %v1704_v48 = vpop.f32.mrb[0].mxu1 }
 0x10b   : > { %v1281_v49 = vpack.c.bf16 %v570_v47, %v570_v47  ;;  %v928_v50 = vmul.f32 %v570_v47, %v570_v47  ;;  %v572_v51 = vpop.f32.mrb[1].mxu0  ;;  %v1297_v52 = vpack.c.bf16 %v1704_v48, %v1704_v48  ;;  %v636_v53 = vpop.f32.mrb[1].mxu1  ;;  %v859_v56 = vsel %vm858_vm4, %v570_v47, 0.0 }
 0x10c   : > { %v573_v54 = vpop.f32.mrb[2].mxu0  ;;  %v1708_v55 = vpop.f32.mrb[2].mxu1 }
 0x10d   : > { %826 = vst.msk [vmem:[%s1702_s18] sm:$0xf] %vm825_vm3, %v1281_v49  ;;  %v1282_v57 = vpack.c.bf16 %v573_v54, %v573_v54  ;;  %v860_v58 = vsel %vm858_vm4, %v573_v54, 0.0  ;;  %v929_v59 = vmul.f32 %v573_v54, %v573_v54  ;;  %v575_v60 = vpop.f32.mrb[3].mxu0  ;;  %842 = vst.msk [vmem:[%s1702_s18 + $0x40] sm:$0xf] %vm825_vm3, %v1297_v52  ;;  %v1298_v63 = vpack.c.bf16 %v1708_v55, %v1708_v55 }
 0x10e   : > { %v639_v61 = vpop.f32.mrb[3].mxu1  ;;  %v861_v62 = vadd.f32 %v860_v58, %v859_v56  ;;  %v960_v0 = vsel %vm858_vm4, %v928_v50, 0.0 }
 0x10f   : > { %827 = vst.msk [vmem:[%s1702_s18 + $0x4] sm:$0xf] %vm825_vm3, %v1282_v57  ;;  %v961_v1 = vsel %vm858_vm4, %v929_v59, 0.0  ;;  %843 = vst.msk [vmem:[%s1702_s18 + $0x44] sm:$0xf] %vm825_vm3, %v1298_v63 }
 0x110   : > { %v962_v2 = vadd.f32 %v961_v1, %v960_v0 }
 0x112   : > { %v578_v3 = vpop.f32.mrb[4].mxu0  ;;  %v1724_v4 = vpop.f32.mrb[4].mxu1 }
 0x113   : > { %v1283_v5 = vpack.c.bf16 %v578_v3, %v578_v3  ;;  %v862_v6 = vsel %vm858_vm4, %v578_v3, 0.0  ;;  %v930_v7 = vmul.f32 %v578_v3, %v578_v3  ;;  %v580_v8 = vpop.f32.mrb[5].mxu0  ;;  %v1299_v9 = vpack.c.bf16 %v1724_v4, %v1724_v4  ;;  %v644_v10 = vpop.f32.mrb[5].mxu1 }
 0x114   : > { %v863_v11 = vadd.f32 %v862_v6, %v861_v62  ;;  %v581_v12 = vpop.f32.mrb[6].mxu0  ;;  %v1729_v13 = vpop.f32.mrb[6].mxu1 }
 0x115   : > { %828 = vst.msk [vmem:[%s1702_s18 + $0x8] sm:$0xf] %vm825_vm3, %v1283_v5  ;;  %v963_v14 = vsel %vm858_vm4, %v930_v7, 0.0  ;;  %v1284_v15 = vpack.c.bf16 %v581_v12, %v581_v12  ;;  %v864_v16 = vsel %vm858_vm4, %v581_v12, 0.0  ;;  %v931_v17 = vmul.f32 %v581_v12, %v581_v12  ;;  %v583_v18 = vpop.f32.mrb[7].mxu0  ;;  %v647_v19 = vpop.f32.mrb[7].mxu1 }
 0x116   : > { %844 = vst.msk [vmem:[%s1702_s18 + $0x48] sm:$0xf] %vm825_vm3, %v1299_v9  ;;  %v964_v20 = vadd.f32 %v963_v14, %v962_v2  ;;  %v865_v21 = vadd.f32 %v864_v16, %v863_v11  ;;  %v1300_v22 = vpack.c.bf16 %v1729_v13, %v1729_v13 }
 0x117   : > { %829 = vst.msk [vmem:[%s1702_s18 + $0xc] sm:$0xf] %vm825_vm3, %v1284_v15  ;;  %v965_v23 = vsel %vm858_vm4, %v931_v17, 0.0 }
 0x118   : > { %v966_v24 = vadd.f32 %v965_v23, %v964_v20  ;;  %845 = vst.msk [vmem:[%s1702_s18 + $0x4c] sm:$0xf] %vm825_vm3, %v1300_v22 }
 0x11a   : > { %v586_v25 = vpop.f32.mrb[8].mxu0  ;;  %v1744_v26 = vpop.f32.mrb[8].mxu1 }
 0x11b   : > { %v1285_v27 = vpack.c.bf16 %v586_v25, %v586_v25  ;;  %v866_v28 = vsel %vm858_vm4, %v586_v25, 0.0  ;;  %v932_v29 = vmul.f32 %v586_v25, %v586_v25  ;;  %v588_v30 = vpop.f32.mrb[9].mxu0  ;;  %v1301_v31 = vpack.c.bf16 %v1744_v26, %v1744_v26  ;;  %v652_v32 = vpop.f32.mrb[9].mxu1 }
 0x11c   : > { %v867_v33 = vadd.f32 %v866_v28, %v865_v21  ;;  %v589_v34 = vpop.f32.mrb[10].mxu0  ;;  %v1749_v35 = vpop.f32.mrb[10].mxu1 }
 0x11d   : > { %830 = vst.msk [vmem:[%s1702_s18 + $0x10] sm:$0xf] %vm825_vm3, %v1285_v27  ;;  %v967_v36 = vsel %vm858_vm4, %v932_v29, 0.0  ;;  %v1286_v37 = vpack.c.bf16 %v589_v34, %v589_v34  ;;  %v868_v38 = vsel %vm858_vm4, %v589_v34, 0.0  ;;  %v933_v39 = vmul.f32 %v589_v34, %v589_v34  ;;  %v591_v40 = vpop.f32.mrb[11].mxu0  ;;  %v655_v41 = vpop.f32.mrb[11].mxu1 }
 0x11e   : > { %846 = vst.msk [vmem:[%s1702_s18 + $0x50] sm:$0xf] %vm825_vm3, %v1301_v31  ;;  %v968_v42 = vadd.f32 %v967_v36, %v966_v24  ;;  %v869_v43 = vadd.f32 %v868_v38, %v867_v33  ;;  %v1302_v44 = vpack.c.bf16 %v1749_v35, %v1749_v35 }
 0x11f   : > { %831 = vst.msk [vmem:[%s1702_s18 + $0x14] sm:$0xf] %vm825_vm3, %v1286_v37  ;;  %v969_v45 = vsel %vm858_vm4, %v933_v39, 0.0 }
 0x120   : > { %v970_v46 = vadd.f32 %v969_v45, %v968_v42  ;;  %847 = vst.msk [vmem:[%s1702_s18 + $0x54] sm:$0xf] %vm825_vm3, %v1302_v44 }
 0x122   : > { %v594_v47 = vpop.f32.mrb[12].mxu0  ;;  %v1764_v49 = vpop.f32.mrb[12].mxu1 }
 0x123   : > { %v1287_v50 = vpack.c.bf16 %v594_v47, %v594_v47  ;;  %v870_v51 = vsel %vm858_vm4, %v594_v47, 0.0  ;;  %v934_v52 = vmul.f32 %v594_v47, %v594_v47  ;;  %v596_v53 = vpop.f32.mrb[13].mxu0  ;;  %v1303_v54 = vpack.c.bf16 %v1764_v49, %v1764_v49  ;;  %v660_v56 = vpop.f32.mrb[13].mxu1 }
 0x124   : > { %v871_v57 = vadd.f32 %v870_v51, %v869_v43  ;;  %v597_v58 = vpop.f32.mrb[14].mxu0  ;;  %v1769_v59 = vpop.f32.mrb[14].mxu1 }
 0x125   : > { %832 = vst.msk [vmem:[%s1702_s18 + $0x18] sm:$0xf] %vm825_vm3, %v1287_v50  ;;  %v971_v60 = vsel %vm858_vm4, %v934_v52, 0.0  ;;  %v1288_v61 = vpack.c.bf16 %v597_v58, %v597_v58  ;;  %v872_v62 = vsel %vm858_vm4, %v597_v58, 0.0  ;;  %v935_v63 = vmul.f32 %v597_v58, %v597_v58  ;;  %v599_v0 = vpop.f32.mrb[15].mxu0  ;;  %v663_v1 = vpop.f32.mrb[15].mxu1 }
 0x126   : > { %848 = vst.msk [vmem:[%s1702_s18 + $0x58] sm:$0xf] %vm825_vm3, %v1303_v54  ;;  %v972_v2 = vadd.f32 %v971_v60, %v970_v46  ;;  %v873_v3 = vadd.f32 %v872_v62, %v871_v57  ;;  %v1304_v5 = vpack.c.bf16 %v1769_v59, %v1769_v59 }
 0x127   : > { %833 = vst.msk [vmem:[%s1702_s18 + $0x1c] sm:$0xf] %vm825_vm3, %v1288_v61  ;;  %v973_v6 = vsel %vm858_vm4, %v935_v63, 0.0 }
 0x128   : > { %v974_v7 = vadd.f32 %v973_v6, %v972_v2  ;;  %849 = vst.msk [vmem:[%s1702_s18 + $0x5c] sm:$0xf] %vm825_vm3, %v1304_v5 }
 0x12a   : > { %v602_v8 = vpop.f32.mrb[16].mxu0  ;;  %v1784_v9 = vpop.f32.mrb[16].mxu1 }
 0x12b   : > { %v1289_v10 = vpack.c.bf16 %v602_v8, %v602_v8  ;;  %v874_v11 = vsel %vm858_vm4, %v602_v8, 0.0  ;;  %v936_v12 = vmul.f32 %v602_v8, %v602_v8  ;;  %v604_v14 = vpop.f32.mrb[17].mxu0  ;;  %v1305_v15 = vpack.c.bf16 %v1784_v9, %v1784_v9  ;;  %v668_v16 = vpop.f32.mrb[17].mxu1 }
 0x12c   : > { %v875_v17 = vadd.f32 %v874_v11, %v873_v3  ;;  %v605_v18 = vpop.f32.mrb[18].mxu0  ;;  %v1789_v19 = vpop.f32.mrb[18].mxu1 }
 0x12d   : > { %834 = vst.msk [vmem:[%s1702_s18 + $0x20] sm:$0xf] %vm825_vm3, %v1289_v10  ;;  %v975_v20 = vsel %vm858_vm4, %v936_v12, 0.0  ;;  %v1290_v21 = vpack.c.bf16 %v605_v18, %v605_v18  ;;  %v876_v22 = vsel %vm858_vm4, %v605_v18, 0.0  ;;  %v937_v23 = vmul.f32 %v605_v18, %v605_v18  ;;  %v607_v24 = vpop.f32.mrb[19].mxu0  ;;  %v671_v25 = vpop.f32.mrb[19].mxu1 }
 0x12e   : > { %850 = vst.msk [vmem:[%s1702_s18 + $0x60] sm:$0xf] %vm825_vm3, %v1305_v15  ;;  %v976_v27 = vadd.f32 %v975_v20, %v974_v7  ;;  %v877_v28 = vadd.f32 %v876_v22, %v875_v17  ;;  %v1306_v29 = vpack.c.bf16 %v1789_v19, %v1789_v19 }
 0x12f   : > { %835 = vst.msk [vmem:[%s1702_s18 + $0x24] sm:$0xf] %vm825_vm3, %v1290_v21  ;;  %v977_v30 = vsel %vm858_vm4, %v937_v23, 0.0 }
 0x130   : > { %v978_v31 = vadd.f32 %v977_v30, %v976_v27  ;;  %851 = vst.msk [vmem:[%s1702_s18 + $0x64] sm:$0xf] %vm825_vm3, %v1306_v29  ;;  %v944_v30 = vmul.f32 %v1704_v48, %v1704_v48 }
 0x132   : > { %v610_v32 = vpop.f32.mrb[20].mxu0  ;;  %v1804_v33 = vpop.f32.mrb[20].mxu1 }
 0x133   : > { %v1291_v34 = vpack.c.bf16 %v610_v32, %v610_v32  ;;  %v878_v36 = vsel %vm858_vm4, %v610_v32, 0.0  ;;  %v938_v37 = vmul.f32 %v610_v32, %v610_v32  ;;  %v612_v38 = vpop.f32.mrb[21].mxu0  ;;  %v1307_v39 = vpack.c.bf16 %v1804_v33, %v1804_v33  ;;  %v676_v40 = vpop.f32.mrb[21].mxu1 }
 0x134   : > { %v879_v41 = vadd.f32 %v878_v36, %v877_v28  ;;  %v613_v42 = vpop.f32.mrb[22].mxu0  ;;  %v1809_v43 = vpop.f32.mrb[22].mxu1 }
 0x135   : > { %836 = vst.msk [vmem:[%s1702_s18 + $0x28] sm:$0xf] %vm825_vm3, %v1291_v34  ;;  %v979_v44 = vsel %vm858_vm4, %v938_v37, 0.0  ;;  %v1292_v45 = vpack.c.bf16 %v613_v42, %v613_v42  ;;  %v880_v46 = vsel %vm858_vm4, %v613_v42, 0.0  ;;  %v939_v47 = vmul.f32 %v613_v42, %v613_v42  ;;  %v615_v50 = vpop.f32.mrb[23].mxu0  ;;  %v679_v51 = vpop.f32.mrb[23].mxu1 }
 0x136   : > { %852 = vst.msk [vmem:[%s1702_s18 + $0x68] sm:$0xf] %vm825_vm3, %v1307_v39  ;;  %v980_v52 = vadd.f32 %v979_v44, %v978_v31  ;;  %v881_v53 = vadd.f32 %v880_v46, %v879_v41  ;;  %v1308_v54 = vpack.c.bf16 %v1809_v43, %v1809_v43  ;;  %v890_v46 = vsel %vm858_vm4, %v1704_v48, 0.0 }
 0x137   : > { %837 = vst.msk [vmem:[%s1702_s18 + $0x2c] sm:$0xf] %vm825_vm3, %v1292_v45  ;;  %v981_v56 = vsel %vm858_vm4, %v939_v47, 0.0  ;;  %v945_v47 = vmul.f32 %v1708_v55, %v1708_v55 }
 0x138   : > { %v982_v57 = vadd.f32 %v981_v56, %v980_v52  ;;  %853 = vst.msk [vmem:[%s1702_s18 + $0x6c] sm:$0xf] %vm825_vm3, %v1308_v54  ;;  %v892_v54 = vsel %vm858_vm4, %v1708_v55, 0.0  ;;  %v946_v56 = vmul.f32 %v1724_v4, %v1724_v4  ;;  %v896_v55 = vsel %vm858_vm4, %v1729_v13, 0.0 }
 0x13a   : > { %v618_v58 = vpop.f32.mrb[24].mxu0  ;;  %v1824_v60 = vpop.f32.mrb[24].mxu1 }
 0x13b   : > { %v1293_v61 = vpack.c.bf16 %v618_v58, %v618_v58  ;;  %v882_v62 = vsel %vm858_vm4, %v618_v58, 0.0  ;;  %v940_v63 = vmul.f32 %v618_v58, %v618_v58  ;;  %v620_v0 = vpop.f32.mrb[25].mxu0  ;;  %v1309_v1 = vpack.c.bf16 %v1824_v60, %v1824_v60  ;;  %v684_v2 = vpop.f32.mrb[25].mxu1 }
 0x13c   : > { %v883_v3 = vadd.f32 %v882_v62, %v881_v53  ;;  %v621_v5 = vpop.f32.mrb[26].mxu0  ;;  %v1829_v6 = vpop.f32.mrb[26].mxu1  ;;  %v991_v53 = vsel %vm858_vm4, %v944_v30, 0.0  ;;  %v993_v58 = vsel %vm858_vm4, %v945_v47, 0.0  ;;  %v947_v62 = vmul.f32 %v1729_v13, %v1729_v13 }
 0x13d   : > { %838 = vst.msk [vmem:[%s1702_s18 + $0x30] sm:$0xf] %vm825_vm3, %v1293_v61  ;;  %v983_v7 = vsel %vm858_vm4, %v940_v63, 0.0  ;;  %v1294_v8 = vpack.c.bf16 %v621_v5, %v621_v5  ;;  %v884_v10 = vsel %vm858_vm4, %v621_v5, 0.0  ;;  %v941_v11 = vmul.f32 %v621_v5, %v621_v5  ;;  %v623_v12 = vpop.f32.mrb[27].mxu0  ;;  %v687_v14 = vpop.f32.mrb[27].mxu1 }
 0x13e   : > { %854 = vst.msk [vmem:[%s1702_s18 + $0x70] sm:$0xf] %vm825_vm3, %v1309_v1  ;;  %v984_v15 = vadd.f32 %v983_v7, %v982_v57  ;;  %v885_v16 = vadd.f32 %v884_v10, %v883_v3  ;;  %v1310_v17 = vpack.c.bf16 %v1829_v6, %v1829_v6  ;;  %v894_v61 = vsel %vm858_vm4, %v1724_v4, 0.0 }
 0x13f   : > { %839 = vst.msk [vmem:[%s1702_s18 + $0x34] sm:$0xf] %vm825_vm3, %v1294_v8  ;;  %v985_v18 = vsel %vm858_vm4, %v941_v11, 0.0  ;;  %v995_v1 = vsel %vm858_vm4, %v946_v56, 0.0  ;;  %v948_v2 = vmul.f32 %v1744_v26, %v1744_v26  ;;  %v997_v7 = vsel %vm858_vm4, %v947_v62, 0.0 }
 0x140   : > { %v986_v20 = vadd.f32 %v985_v18, %v984_v15  ;;  %855 = vst.msk [vmem:[%s1702_s18 + $0x74] sm:$0xf] %vm825_vm3, %v1310_v17  ;;  %v898_v4 = vsel %vm858_vm4, %v1744_v26, 0.0  ;;  %v949_v8 = vmul.f32 %v1749_v35, %v1749_v35  ;;  %v900_v13 = vsel %vm858_vm4, %v1749_v35, 0.0 }
 0x141   : > { %v999_v12 = vsel %vm858_vm4, %v948_v2, 0.0  ;;  %v950_v14 = vmul.f32 %v1764_v49, %v1764_v49  ;;  %v902_v26 = vsel %vm858_vm4, %v1764_v49, 0.0  ;;  %v951_v18 = vmul.f32 %v1769_v59, %v1769_v59 }
 0x142   : > { %v626_v21 = vpop.f32.mrb[28].mxu0  ;;  %v1844_v22 = vpop.f32.mrb[28].mxu1  ;;  %v1001_v17 = vsel %vm858_vm4, %v949_v8, 0.0  ;;  %v904_v35 = vsel %vm858_vm4, %v1769_v59, 0.0  ;;  %v906_v49 = vsel %vm858_vm4, %v1784_v9, 0.0  ;;  %v908_v59 = vsel %vm858_vm4, %v1789_v19, 0.0 }
 0x143   : > { %v1295_v23 = vpack.c.bf16 %v626_v21, %v626_v21  ;;  %v886_v24 = vsel %vm858_vm4, %v626_v21, 0.0  ;;  %v942_v25 = vmul.f32 %v626_v21, %v626_v21  ;;  %v628_v27 = vpop.f32.mrb[29].mxu0  ;;  %v1311_v28 = vpack.c.bf16 %v1844_v22, %v1844_v22  ;;  %v692_v29 = vpop.f32.mrb[29].mxu1 }
 0x144   : > { %v887_v31 = vadd.f32 %v886_v24, %v885_v16  ;;  %v629_v32 = vpop.f32.mrb[30].mxu0  ;;  %v1851_v34 = vpop.f32.mrb[30].mxu1  ;;  %v952_v24 = vmul.f32 %v1784_v9, %v1784_v9  ;;  %v953_v29 = vmul.f32 %v1789_v19, %v1789_v19  ;;  %v910_v9 = vsel %vm858_vm4, %v1804_v33, 0.0 }
 0x145   : > { %840 = vst.msk [vmem:[%s1702_s18 + $0x38] sm:$0xf] %vm825_vm3, %v1295_v23  ;;  %v987_v36 = vsel %vm858_vm4, %v942_v25, 0.0  ;;  %v1296_v37 = vpack.c.bf16 %v629_v32, %v629_v32  ;;  %v888_v38 = vsel %vm858_vm4, %v629_v32, 0.0  ;;  %v943_v39 = vmul.f32 %v629_v32, %v629_v32  ;;  %v631_v40 = vpop.f32.mrb[31].mxu0  ;;  %v695_v41 = vpop.f32.mrb[31].mxu1 }
 0x146   : > { %856 = vst.msk [vmem:[%s1702_s18 + $0x78] sm:$0xf] %vm825_vm3, %v1311_v28  ;;  %v988_v42 = vadd.f32 %v987_v36, %v986_v20  ;;  %v889_v44 = vadd.f32 %v888_v38, %v887_v31  ;;  %v1312_v45 = vpack.c.bf16 %v1851_v34, %v1851_v34  ;;  %v1003_v23 = vsel %vm858_vm4, %v950_v14, 0.0 }
 0x147   : > { %841 = vst.msk [vmem:[%s1702_s18 + $0x3c] sm:$0xf] %vm825_vm3, %v1296_v37  ;;  %v989_v50 = vsel %vm858_vm4, %v943_v39, 0.0  ;;  %v1005_v28 = vsel %vm858_vm4, %v951_v18, 0.0  ;;  %v1007_v32 = vsel %vm858_vm4, %v952_v24, 0.0  ;;  %v954_v36 = vmul.f32 %v1804_v33, %v1804_v33 }
 0x148   : > { %v891_v51 = vadd.f32 %v890_v46, %v889_v44  ;;  %v990_v52 = vadd.f32 %v989_v50, %v988_v42  ;;  %857 = vst.msk [vmem:[%s1702_s18 + $0x7c] sm:$0xf] %vm825_vm3, %v1312_v45  ;;  %v1009_v39 = vsel %vm858_vm4, %v953_v29, 0.0  ;;  %v955_v40 = vmul.f32 %v1809_v43, %v1809_v43 }
 0x149   : > { %v1011_v44 = vsel %vm858_vm4, %v954_v36, 0.0  ;;  %v912_v19 = vsel %vm858_vm4, %v1809_v43, 0.0  ;;  %v956_v45 = vmul.f32 %v1824_v60, %v1824_v60  ;;  %v914_v33 = vsel %vm858_vm4, %v1824_v60, 0.0 }
 0x14a   : > { %v893_v48 = vadd.f32 %v892_v54, %v891_v51  ;;  %v992_v57 = vadd.f32 %v991_v53, %v990_v52  ;;  %v1013_v50 = vsel %vm858_vm4, %v955_v40, 0.0  ;;  %v957_v51 = vmul.f32 %v1829_v6, %v1829_v6 }
 0x14b   : > { %v958_v52 = vmul.f32 %v1844_v22, %v1844_v22  ;;  %v1015_v43 = vsel %vm858_vm4, %v956_v45, 0.0  ;;  %v916_v56 = vsel %vm858_vm4, %v1829_v6, 0.0  ;;  %v959_v62 = vmul.f32 %v1851_v34, %v1851_v34 }
 0x14c   : > { %v895_v63 = vadd.f32 %v894_v61, %v893_v48  ;;  %v994_v0 = vadd.f32 %v993_v58, %v992_v57  ;;  %v918_v48 = vsel %vm858_vm4, %v1844_v22, 0.0  ;;  %v1017_v60 = vsel %vm858_vm4, %v957_v51, 0.0 }
 0x14d   : > { %v1019_v61 = vsel %vm858_vm4, %v958_v52, 0.0  ;;  %v1021_v6 = vsel %vm858_vm4, %v959_v62, 0.0 }
 0x14e   : > { %v897_v3 = vadd.f32 %v896_v55, %v895_v63  ;;  %v996_v5 = vadd.f32 %v995_v1, %v994_v0  ;;  %v920_v1 = vsel %vm858_vm4, %v1851_v34, 0.0 }
 0x150   : > { %v998_v10 = vadd.f32 %v997_v7, %v996_v5  ;;  %v899_v11 = vadd.f32 %v898_v4, %v897_v3 }
 0x152   : > { %v901_v15 = vadd.f32 %v900_v13, %v899_v11  ;;  %v1000_v16 = vadd.f32 %v999_v12, %v998_v10 }
 0x154   : > { %v903_v20 = vadd.f32 %v902_v26, %v901_v15  ;;  %v1002_v21 = vadd.f32 %v1001_v17, %v1000_v16 }
 0x156   : > { %v905_v25 = vadd.f32 %v904_v35, %v903_v20  ;;  %v1004_v27 = vadd.f32 %v1003_v23, %v1002_v21 }
 0x158   : > { %v907_v30 = vadd.f32 %v906_v49, %v905_v25  ;;  %v1006_v31 = vadd.f32 %v1005_v28, %v1004_v27 }
 0x15a   : > { %v1008_v37 = vadd.f32 %v1007_v32, %v1006_v31  ;;  %v909_v38 = vadd.f32 %v908_v59, %v907_v30 }
 0x15c   : > { %v1010_v41 = vadd.f32 %v1009_v39, %v1008_v37  ;;  %v911_v42 = vadd.f32 %v910_v9, %v909_v38 }
 0x15e   : > { %v1012_v46 = vadd.f32 %v1011_v44, %v1010_v41  ;;  %v913_v47 = vadd.f32 %v912_v19, %v911_v42 }
 0x160   : > { %v1014_v53 = vadd.f32 %v1013_v50, %v1012_v46  ;;  %v915_v54 = vadd.f32 %v914_v33, %v913_v47 }
 0x162   : > { %v1016_v57 = vadd.f32 %v1015_v43, %v1014_v53  ;;  %v917_v58 = vadd.f32 %v916_v56, %v915_v54 }
 0x164   : > { %v1018_v63 = vadd.f32 %v1017_v60, %v1016_v57  ;;  %v919_v0 = vadd.f32 %v918_v48, %v917_v58 }
 0x166   : > { %v1020_v55 = vadd.f32 %v1019_v61, %v1018_v63  ;;  %v921_v2 = vadd.f32 %v920_v1, %v919_v0 }
 0x168   : > { %v922_v3 = vrot.slane %v921_v2, 4  ;;  %v1022_v22 = vadd.f32 %v1021_v6, %v1020_v55 }
 0x16a   : > { %v923_v5 = vadd.f32 %v922_v3, %v921_v2  ;;  %v1023_v7 = vrot.slane %v1022_v22, 4 }
 0x16c   : > { %v924_v4 = vrot.slane %v923_v5, 2  ;;  %v1024_v8 = vadd.f32 %v1023_v7, %v1022_v22 }
 0x16e   : > { %v925_v10 = vadd.f32 %v924_v4, %v923_v5  ;;  %v1025_v11 = vrot.slane %v1024_v8, 2 }
 0x170   : > { %v926_v12 = vrot.slane %v925_v10, 1  ;;  %v1026_v13 = vadd.f32 %v1025_v11, %v1024_v8 }
 0x172   : > { %v1027_v14 = vrot.slane %v1026_v13, 1  ;;  %v927_v34 = vadd.f32 %v926_v12, %v925_v10 }
 0x174   : > { %v1028_v15 = vadd.f32 %v1027_v14, %v1026_v13 }
 0x176   : > { %v1029_v16 = vsel %vm529_vm1, %v927_v34, %v1028_v15 }
 0x177   : > { %1031 = vst.msk [vmem:[%s206_s19] sm:$0x3] %vm1030_vm5, %v1029_v16 }
 0x178   : > { %1461 = shalt.err (!%p1458_p5)
}
 0x179   : > { %s1462_s5 = scalar_lea.hbm %s1949_s27, 32  ;;  %s1466_s10 = scalar_lea.hbm %s2000_s3, 64 }
 0x17a   : > { %p1463_p6 = scmp.ne.s32.totalorder %s1949_s27, %s1462_s5  ;;  %p1467_p10 = scmp.lt.u32.totalorder %s1949_s27, %s2000_s3 }
 0x17b   : > { %p1468_p11 = scmp.lt.u32.totalorder %s1466_s10, %s1462_s5  ;;  %p1470_p13 = scmp.lt.u32.totalorder %s1462_s5, %s1949_s27 }
 0x17c   : > { %p1464_p7 = pnand %p1463_p6, %p1591_p4 }
 0x17d   : > { %p1469_p12 = por %p1468_p11, %p1467_p10 }
 0x17e   : > { %p1465_p9 = pneg %p1464_p7 }
 0x17f   : > { %p1471_p0 = por %p1470_p13, %p1469_p12 }
 0x181   : > { %p1472_p1 = pnand %p1471_p0, %p1465_p9 }
 0x183   : > { %1475 = shalt.err (!%p1472_p1)
}
 0x184   : > { %1333 = dma.vmem_to_hbm [thread:$0]  (%p1591_p4), %s1951_s21, 32, %s1949_s27, %s1041_s28  }
 0x185 PF: > { %p1339_p2 = scmp.ge.s32.totalorder %s1526_s17, 2  ;;  %s1082_s6 = sand.u32 1, %s1506_s12  }
 0x186   : > { %s1083_s15 = scalar_lea.sflag [#allocation3], %s1082_s6 }
 0x187   : > { %p1336_p3 = pnand %p1339_p2, %p1598_p8 }
 0x189   : > { %1501 = dma.done.wait (!%p1336_p3), %s1083_s15, 32  }
 0x18a   : > { %1503 = vsyncadd (!%p1336_p3), %s1083_s15, 4294967264  ;;  %s17_s17 = sadd.s32 1, %s1526_s17   ;;  %s2003_s12 = smov %s1510_s13 }
 0x18b   : > { %p14_p5 = scmp.ge.s32.totalorder %s17_s17, 4   ;;  %s2004_s13 = smov %s1514_s14 }
 0x18c   : > { %s2005_s14 = smov %s1604_s25  ;;  %s2006_s15 = smov %s1522_s16 }
 0x18d   : > { %s2007_s16 = smov %s2009_s20  ;;  %16 = sbr.rel (!%p14_p5) target bundleno = 4 (0x4), region = 78 }
 0x194   :  { %1088 = vsyncpa [#allocation3], 1 }
 0x195   :  { %1090 = vsyncpa [#allocation3 + $0x1], 1 }

</bundles_post_ra>
